<compile_context>
chip_gen: v7x
topology: tpu7x:2x2x1
jax: 0.10.0
libtpu: 0.0.40
codegen_flags: <defaults>
</compile_context>

<pallas_src>
import functools

import jax
import jax.numpy as jnp
from jax.experimental import pallas as pl
from jax.experimental.pallas import tpu as pltpu


def _round_up(x, m):
    return ((x + m - 1) // m) * m


def _wsce_kernel(inp_ref, weights_ref, out_ref, *, num_classes, inv_scale):
    """One tile: (2C, TS, L) [logits; one-hot targets] -> (TS, L) weighted CE."""
    v = inp_ref[...].astype(jnp.float32)          # (2C, TS, L)
    x = v[:num_classes] * inv_scale               # (C, TS, L) scaled logits
    t = v[num_classes:]                           # (C, TS, L) one-hot targets

    # Reductions over the leading class axis: pure VPU max/add, no cross-lane work.
    m = jnp.max(x, axis=0)                                        # (TS, L)
    lse = m + jnp.log(jnp.sum(jnp.exp(x - m[None]), axis=0))      # (TS, L)
    label_logit = jnp.sum(t * x, axis=0)                          # (TS, L)

    w = weights_ref[...].astype(jnp.float32)                      # (TS, L)
    out_ref[...] = (lse - label_logit) * w


def weighted_softmax_classification_loss(prediction, target, weights, *,
                                         logit_scale=1.0, lanes=512, tile_rows=128):
    """Pallas implementation of WeightedSoftmaxClassificationLoss.forward."""
    B, N, C = prediction.shape
    R = B * N

    # Lane width: multiple of 128, capped so tiny problems don't over-pad.
    L = min(int(lanes), _round_up(R, 128))
    L = max(L, 128)
    rows = (R + L - 1) // L
    R_pad = rows * L

    # glue: one class-major, lane-dense slab holding both logits and targets.
    # (R, C)+(R, C) -> (R, 2C) -> (2C, R) -> pad -> (2C, rows, L). XLA fuses these
    # reshapes/transpose/pad/concat into a single copy fusion.
    p2 = prediction.reshape(R, C)
    t2 = target.astype(prediction.dtype).reshape(R, C)   # one-hot 0/1 is exact in bf16
    combined = jnp.transpose(jnp.concatenate([p2, t2], axis=1))   # (2C, R)
    if R_pad != R:
        combined = jnp.pad(combined, ((0, 0), (0, R_pad - R)))
    combined = combined.reshape(2 * C, rows, L)

    w = weights.reshape(R)
    if R_pad != R:
        w = jnp.pad(w, (0, R_pad - R))                   # zero weight -> padded loss = 0
    w = w.reshape(rows, L)

    # Row-tile: ~2 MiB of input per step at TS=128, L=512, C=4.  TS is either a
    # multiple of 8 or the full `rows` extent (both satisfy the (8,128) block rule).
    TS = min(int(tile_rows), rows)
    grid_n = (rows + TS - 1) // TS                       # ragged edge block is masked

    kernel = functools.partial(_wsce_kernel, num_classes=C,
                               inv_scale=1.0 / float(logit_scale))
    out = pl.pallas_call(
        kernel,
        out_shape=jax.ShapeDtypeStruct((rows, L), jnp.float32),
        grid=(grid_n,),
        in_specs=[
            pl.BlockSpec((2 * C, TS, L), lambda i: (0, i, 0)),
            pl.BlockSpec((TS, L), lambda i: (i, 0)),
        ],
        out_specs=pl.BlockSpec((TS, L), lambda i: (i, 0)),
        compiler_params=pltpu.CompilerParams(
            dimension_semantics=("parallel",)),
    )(combined, w)

    return out.reshape(R_pad)[:R].reshape(B, N)


def _reference_loss(prediction, target, weights, *, logit_scale=1.0):
    """Pure-JAX reference mirroring the PyTorch module."""
    logits = prediction.astype(jnp.float32) / float(logit_scale)
    labels = jnp.argmax(target, axis=-1)
    lse = jax.scipy.special.logsumexp(logits, axis=-1)
    label_logit = jnp.take_along_axis(logits, labels[..., None], axis=-1)[..., 0]
    return (lse - label_logit) * weights.astype(jnp.float32)


if __name__ == "__main__":
    # Module params: logit_scale used in forward; loss_weight is NOT applied in forward().
    LOGIT_SCALE = 1.0

    B, N, C = 2, 200, 4   # [batch, num_anchors, num_classes]; N not a multiple of 128

    key = jax.random.PRNGKey(0)
    k1, k2, k3 = jax.random.split(key, 3)
    prediction = jax.random.normal(k1, (B, N, C), dtype=jnp.float32)
    labels = jax.random.randint(k2, (B, N), 0, C, dtype=jnp.int32)
    target = jax.nn.one_hot(labels, C, dtype=jnp.float32)
    weights = jax.random.uniform(k3, (B, N), dtype=jnp.float32)

    loss = weighted_softmax_classification_loss(
        prediction, target, weights, logit_scale=LOGIT_SCALE)
    loss = jax.block_until_ready(loss)

    ref = _reference_loss(prediction, target, weights, logit_scale=LOGIT_SCALE)
    assert loss.shape == (B, N)
    assert jnp.allclose(loss, ref, rtol=1e-5, atol=1e-5), (loss, ref)

    print("KERNEL_OK")
</pallas_src>

<mosaic_0001>
module attributes {stable_mosaic.version = 11 : i64} {
  func.func @_wsce_kernel(%arg0: i32, %arg1: memref<8x1x512xf32, #tpu.memory_space<vmem>>, %arg2: memref<1x512xf32, #tpu.memory_space<vmem>>, %arg3: memref<1x512xf32, #tpu.memory_space<vmem>>) attributes {dimension_semantics = [#tpu.dimension_semantics<parallel>], iteration_bounds = array<i64: 1>, scalar_prefetch = 0 : i64, scratch_operands = 0 : i64, tpu.core_type = #tpu.core_type<tc>, window_params = [{transform_indices = @transform_0, window_bounds = array<i64: 8, 1, 512>}, {transform_indices = @transform_1, window_bounds = array<i64: 1, 512>}, {transform_indices = @transform_2, window_bounds = array<i64: 1, 512>}]} {
    %c0 = arith.constant 0 : index
    %c0_0 = arith.constant 0 : index
    %c0_1 = arith.constant 0 : index
    %0 = vector.load %arg1[%c0, %c0_0, %c0_1] : memref<8x1x512xf32, #tpu.memory_space<vmem>>, vector<8x1x512xf32>
    %1 = vector.extract_strided_slice %0 {offsets = [0, 0, 0], sizes = [4, 1, 512], strides = [1, 1, 1]} : vector<8x1x512xf32> to vector<4x1x512xf32>
    %cst = arith.constant 1.000000e+00 : f32
    %2 = vector.broadcast %cst : f32 to vector<4x1x512xf32>
    %3 = arith.mulf %1, %2 : vector<4x1x512xf32>
    %4 = vector.extract_strided_slice %0 {offsets = [4, 0, 0], sizes = [4, 1, 512], strides = [1, 1, 1]} : vector<8x1x512xf32> to vector<4x1x512xf32>
    %cst_2 = arith.constant dense<0xFF800000> : vector<1x512xf32>
    %5 = vector.multi_reduction <maximumf>, %3, %cst_2 [0] : vector<4x1x512xf32> to vector<1x512xf32>
    %6 = vector.shape_cast %5 : vector<1x512xf32> to vector<1x1x512xf32>
    %7 = vector.broadcast %6 : vector<1x1x512xf32> to vector<4x1x512xf32>
    %8 = arith.subf %3, %7 : vector<4x1x512xf32>
    %9 = math.exp %8 : vector<4x1x512xf32>
    %cst_3 = arith.constant dense<0.000000e+00> : vector<1x512xf32>
    %10 = vector.multi_reduction <add>, %9, %cst_3 [0] : vector<4x1x512xf32> to vector<1x512xf32>
    %11 = math.log %10 : vector<1x512xf32>
    %12 = arith.addf %5, %11 : vector<1x512xf32>
    %13 = arith.mulf %4, %3 : vector<4x1x512xf32>
    %cst_4 = arith.constant dense<0.000000e+00> : vector<1x512xf32>
    %14 = vector.multi_reduction <add>, %13, %cst_4 [0] : vector<4x1x512xf32> to vector<1x512xf32>
    %c0_5 = arith.constant 0 : index
    %c0_6 = arith.constant 0 : index
    %15 = vector.load %arg2[%c0_5, %c0_6] : memref<1x512xf32, #tpu.memory_space<vmem>>, vector<1x512xf32>
    %16 = arith.subf %12, %14 : vector<1x512xf32>
    %17 = arith.mulf %16, %15 : vector<1x512xf32>
    %c0_7 = arith.constant 0 : index
    %c0_8 = arith.constant 0 : index
    %18 = vector.load %arg3[%c0_7, %c0_8] : memref<1x512xf32, #tpu.memory_space<vmem>>, vector<1x512xf32>
    tpu.vector_store %arg3[%c0_7, %c0_8], %17 {strides = array<i32>} : memref<1x512xf32, #tpu.memory_space<vmem>>, vector<1x512xf32>,
    return
  }
  func.func @transform_0(%arg0: i32) -> (i32, i32, i32) {
    %c0_i32 = arith.constant 0 : i32
    %c0_i32_0 = arith.constant 0 : i32
    %c0_i32_1 = arith.constant 0 : i32
    return %c0_i32, %arg0, %c0_i32_0 : i32, i32, i32
  }
  func.func @transform_1(%arg0: i32) -> (i32, i32) {
    %c0_i32 = arith.constant 0 : i32
    %c0_i32_0 = arith.constant 0 : i32
    return %arg0, %c0_i32 : i32, i32
  }
  func.func @transform_2(%arg0: i32) -> (i32, i32) {
    %c0_i32 = arith.constant 0 : i32
    %c0_i32_0 = arith.constant 0 : i32
    return %arg0, %c0_i32 : i32, i32
  }
}

</mosaic_0001>

<bundles_post_ra>
// kernel: tpu_custom_call.1
= control target key start
LH: loop header
LB: loop body
LE: loop exit
PB: predicated region body
PF: predicated region fallthrough
CT: control target
= control target key end

     0   :  { %7 = vsyncpa [#allocation3], 0  ;;  %s672_s0 = inlined_call_operand.hbm [shape: f32[8,1,512], index: 0, kind: input, shape index: {}]   ;;  %s673_s1 = inlined_call_operand.hbm [shape: f32[1,512], index: 1, kind: input, shape index: {}]   ;;  %s674_s2 = inlined_call_operand.hbm [shape: f32[1,512], index: 2, kind: output, shape index: {}]  }
   0x1   :  { %8 = vsyncpa [#allocation6], 0 }
   0x2   :  { %9 = vsyncpa [#allocation4], 0  ;;  %s479_s9 = smov [#allocation2]   ;;  %s407_s13 = scalar_lea.hbm %s672_s0, 512 }
   0x3   :  { %s15_s10 = sshll.u32 %s479_s9, 4  ;;  %p408_p0 = scmp.ne.s32.totalorder %s672_s0, %s407_s13  ;;  %s16_s10 = int_to_ptr.vmem [resolvable:$true] %s15_s10 }
   0x4   :  { %p411_p1 = scmp.lt.u32.totalorder %s407_s13, %s672_s0 }
   0x6   :  { %p413_p2 = pnand %p411_p1, %p408_p0 }
   0x8   :  { %416 = shalt.err (!%p413_p2)
}
   0x9   :  { %s417_s18 = scalar_lea.vmem %s16_s10, 512  ;;  %p422_p4 = scmp.lt.s32.totalorder %s16_s10, %s16_s10 }
   0xa   :  { %p418_p3 = scmp.ne.s32.totalorder %s16_s10, %s417_s18  ;;  %p423_p5 = scmp.lt.s32.totalorder %s417_s18, %s417_s18 }
   0xc   :  { %p424_p6 = por %p423_p5, %p422_p4 }
   0xe   :  { %p425_p7 = pnand %p424_p6, %p418_p3 }
  0x10   :  { %428 = shalt.err (!%p425_p7)
}
  0x11   :  { %s480_s19 = smov 64   ;;  %s481_s20 = smov 4  }
  0x12   :  { %21 = dma.hbm_to_vmem [thread:$0]  %s672_s0, 512, %s16_s10, [#allocation3], %s480_s19, %s480_s19, %s481_s20  }
  0x13   :  { %s482_s23 = smov [#allocation5]   ;;  %s429_s27 = scalar_lea.hbm %s673_s1, 64 }
  0x14   :  { %s28_s24 = sshll.u32 %s482_s23, 4  ;;  %p430_p8 = scmp.ne.s32.totalorder %s673_s1, %s429_s27  ;;  %s29_s24 = int_to_ptr.vmem [resolvable:$true] %s28_s24 }
  0x15   :  { %p433_p9 = scmp.lt.u32.totalorder %s429_s27, %s673_s1 }
  0x17   :  { %p435_p10 = pnand %p433_p9, %p430_p8 }
  0x19   :  { %438 = shalt.err (!%p435_p10)
}
  0x1a   :  { %s439_s4 = scalar_lea.vmem %s29_s24, 64  ;;  %p444_p12 = scmp.lt.s32.totalorder %s29_s24, %s29_s24 }
  0x1b   :  { %p440_p11 = scmp.ne.s32.totalorder %s29_s24, %s439_s4  ;;  %p445_p13 = scmp.lt.s32.totalorder %s439_s4, %s439_s4 }
  0x1d   :  { %p446_p0 = por %p445_p13, %p444_p12 }
  0x1f   :  { %p447_p1 = pnand %p446_p0, %p440_p11 }
  0x21   :  { %450 = shalt.err (!%p447_p1)
}
  0x22   :  { %31 = dma.hbm_to_vmem [thread:$0]  %s673_s1, 64, %s29_s24, [#allocation6]  }
  0x23   :  { %473 = dma.done.wait [#allocation3], 512  }
  0x24   :  { %474 = vsyncadd [#allocation3], 4294966784 }
  0x25   :  { %475 = dma.done.wait [#allocation6], 64  }
  0x26   :  { %476 = vsyncadd [#allocation6], 4294967232  ;;  %v46_v0 = vlaneseq  ;;  %v38_v2 = vld [vmem:[#allocation2] sm:$0xf]  ;;  %v39_v3 = vld [vmem:[#allocation2 + $0x4] sm:$0xf] }
  0x27   :  { %v40_v4 = vld [vmem:[#allocation2 + $0x8] sm:$0xf]  ;;  %v41_v5 = vld [vmem:[#allocation2 + $0xc] sm:$0xf]  ;;  %v42_v12 = vld [vmem:[#allocation2 + $0x10] sm:$0xf] }
  0x28   :  { %vm524_vm0 = vcmp.lt.s32.totalorder %v46_v0, 512  ;;  %v43_v14 = vld [vmem:[#allocation2 + $0x14] sm:$0xf]  ;;  %v538_v15 = vshrl.u32 %v46_v0, 7  ;;  %v44_v20 = vld [vmem:[#allocation2 + $0x18] sm:$0xf]  ;;  %v220_v21 = vmul.f32 %v42_v12, %v38_v2 }
  0x29   :  { %v50_v6 = vsel %vm524_vm0, %v38_v2, -inf  ;;  %v51_v7 = vsel %vm524_vm0, %v39_v3, -inf  ;;  %v52_v8 = vsel %vm524_vm0, %v40_v4, -inf  ;;  %v53_v9 = vsel %vm524_vm0, %v41_v5, -inf  ;;  %v45_v30 = vld [vmem:[#allocation2 + $0x1c] sm:$0xf] }
  0x2a   :  { %v54_v10 = vmax.f32 %v50_v6, %v51_v7  ;;  %v55_v11 = vmax.f32 %v52_v8, %v53_v9  ;;  %v221_v25 = vmul.f32 %v43_v14, %v39_v3  ;;  %v545_v27 = vsub.s32 0, %v538_v15  ;;  %s484_s1 = smov [#allocation7]  }
  0x2b   :  { %v548_v28 = vsub.s32 1, %v538_v15  ;;  %v551_v29 = vsub.s32 2, %v538_v15  ;;  %v554_v31 = vsub.s32 3, %v538_v15  ;;  %v556_v32 = vmul.f32 %v44_v20, %v40_v4  ;;  %s375_s6 = sshll.u32 %s484_s1, 4  ;;  %s376_s6 = int_to_ptr.vmem [resolvable:$true] %s375_s6 }
  0x2c   :  { %v536_v13 = vmax.f32 %v54_v10, %v55_v11  ;;  %v231_v33 = vrot.slane %v220_v21, %v545_v27  ;;  %v247_v35 = vrot.slane %v221_v25, %v545_v27  ;;  %vm153_vm1 = vcmask 1040384   ;;  %s451_s7 = scalar_lea.vmem %s376_s6, 64  ;;  %p456_p3 = scmp.lt.s32.totalorder %s376_s6, %s376_s6 }
  0x2d   :  { %v235_v34 = vrot.slane %v220_v21, %v548_v28  ;;  %v251_v36 = vrot.slane %v221_v25, %v548_v28  ;;  %v562_v37 = vmul.f32 %v45_v30, %v41_v5  ;;  %v239_v38 = vrot.slane %v220_v21, %v551_v29  ;;  %p452_p2 = scmp.ne.s32.totalorder %s376_s6, %s451_s7  ;;  %p457_p4 = scmp.lt.s32.totalorder %s451_s7, %s451_s7 }
  0x2e   :  { %v57_v16 = vsub.f32 %v38_v2, %v536_v13  ;;  %v58_v17 = vsub.f32 %v39_v3, %v536_v13  ;;  %v59_v18 = vsub.f32 %v40_v4, %v536_v13  ;;  %v60_v19 = vsub.f32 %v41_v5, %v536_v13 }
  0x2f   :  { %v243_v39 = vrot.slane %v220_v21, %v554_v31  ;;  %v255_v40 = vrot.slane %v221_v25, %v551_v29  ;;  %v259_v41 = vrot.slane %v221_v25, %v554_v31  ;;  %v263_v42 = vrot.slane %v556_v32, %v545_v27  ;;  %p458_p5 = por %p457_p4, %p456_p3 }
  0x30   :  { %v61_v22 = vmul.f32 1.442695, %v57_v16  ;;  %v63_v23 = vmul.f32 1.442695, %v58_v17  ;;  %v65_v24 = vmul.f32 1.442695, %v59_v18  ;;  %v267_v43 = vrot.slane %v556_v32, %v548_v28 }
  0x31   :  { %v67_v26 = vmul.f32 1.442695, %v60_v19  ;;  %v308_v44 = vsel %vm153_vm1, %v231_v33, 0.0  ;;  %v309_v45 = vsel %vm153_vm1, %v247_v35, 0.0  ;;  %v315_v46 = vsel %vm153_vm1, %v235_v34, 0.0  ;;  %p459_p6 = pnand %p458_p5, %p452_p2 }
  0x32   :  { %391 = vpow2.f32 %v61_v22  ;;  %v316_v47 = vsel %vm153_vm1, %v251_v36, 0.0  ;;  %v271_v48 = vrot.slane %v556_v32, %v551_v29  ;;  %v275_v49 = vrot.slane %v556_v32, %v554_v31 }
  0x33   :  { %393 = vpow2.f32 %v63_v23  ;;  %v279_v50 = vrot.slane %v562_v37, %v545_v27  ;;  %v283_v51 = vrot.slane %v562_v37, %v548_v28  ;;  %v287_v52 = vrot.slane %v562_v37, %v551_v29 }
  0x34   :  { %395 = vpow2.f32 %v65_v24  ;;  %v291_v53 = vrot.slane %v562_v37, %v554_v31  ;;  %v588_v54 = vadd.f32 %v309_v45, %v308_v44  ;;  %v591_v55 = vsel %vm153_vm1, %v263_v42, 0.0 }
  0x35   :  { %397 = vpow2.f32 %v67_v26  ;;  %v593_v56 = vadd.f32 %v316_v47, %v315_v46  ;;  %v318_v57 = vsel %vm153_vm1, %v267_v43, 0.0  ;;  %v322_v59 = vsel %vm153_vm1, %v239_v38, 0.0 }
  0x36   :  { %v323_v60 = vsel %vm153_vm1, %v255_v40, 0.0  ;;  %v329_v61 = vsel %vm153_vm1, %v243_v39, 0.0  ;;  %v330_v62 = vsel %vm153_vm1, %v259_v41, 0.0  ;;  %v320_v32 = vsel %vm153_vm1, %v283_v51, 0.0 }
  0x3c   :  { %v392_v58 = vpop.eup %391 }
  0x3d   :  { %v394_v63 = vpop.eup %393  ;;  %v76_v0 = vrot.slane %v392_v58, %v545_v27  ;;  %v80_v2 = vrot.slane %v392_v58, %v548_v28  ;;  %v84_v3 = vrot.slane %v392_v58, %v551_v29  ;;  %v88_v4 = vrot.slane %v392_v58, %v554_v31 }
  0x3e   :  { %v396_v5 = vpop.eup %395  ;;  %v92_v6 = vrot.slane %v394_v63, %v545_v27  ;;  %v96_v7 = vrot.slane %v394_v63, %v548_v28  ;;  %v100_v8 = vrot.slane %v394_v63, %v551_v29  ;;  %v104_v9 = vrot.slane %v394_v63, %v554_v31 }
  0x3f   :  { %v398_v10 = vpop.eup %397  ;;  %v108_v11 = vrot.slane %v396_v5, %v545_v27  ;;  %v112_v12 = vrot.slane %v396_v5, %v548_v28  ;;  %v116_v14 = vrot.slane %v396_v5, %v551_v29  ;;  %v120_v16 = vrot.slane %v396_v5, %v554_v31 }
  0x40   :  { %v124_v17 = vrot.slane %v398_v10, %v545_v27  ;;  %v128_v18 = vrot.slane %v398_v10, %v548_v28  ;;  %v132_v19 = vrot.slane %v398_v10, %v551_v29  ;;  %v136_v20 = vrot.slane %v398_v10, %v554_v31 }
  0x41   :  { %v154_v21 = vsel %vm153_vm1, %v76_v0, 0.0  ;;  %v155_v22 = vsel %vm153_vm1, %v92_v6, 0.0  ;;  %v157_v23 = vsel %vm153_vm1, %v108_v11, 0.0  ;;  %v161_v24 = vsel %vm153_vm1, %v80_v2, 0.0 }
  0x42   :  { %v156_v25 = vadd.f32 %v155_v22, %v154_v21  ;;  %v159_v26 = vsel %vm153_vm1, %v124_v17, 0.0  ;;  %v162_v30 = vsel %vm153_vm1, %v96_v7, 0.0  ;;  %v164_v33 = vsel %vm153_vm1, %v112_v12, 0.0 }
  0x43   :  { %v163_v34 = vadd.f32 %v162_v30, %v161_v24  ;;  %v166_v35 = vsel %vm153_vm1, %v128_v18, 0.0  ;;  %v168_v36 = vsel %vm153_vm1, %v84_v3, 0.0  ;;  %v169_v38 = vsel %vm153_vm1, %v100_v8, 0.0 }
  0x44   :  { %v158_v39 = vadd.f32 %v157_v23, %v156_v25  ;;  %v170_v40 = vadd.f32 %v169_v38, %v168_v36  ;;  %v171_v41 = vsel %vm153_vm1, %v116_v14, 0.0  ;;  %v173_v42 = vsel %vm153_vm1, %v132_v19, 0.0 }
  0x45   :  { %v165_v43 = vadd.f32 %v164_v33, %v163_v34  ;;  %v175_v44 = vsel %vm153_vm1, %v88_v4, 0.0  ;;  %v176_v45 = vsel %vm153_vm1, %v104_v9, 0.0  ;;  %v178_v46 = vsel %vm153_vm1, %v120_v16, 0.0  ;;  %v336_v34 = vld [vmem:[#allocation5] sm:$0xf] }
  0x46   :  { %v160_v47 = vadd.f32 %v159_v26, %v158_v39  ;;  %v172_v58 = vadd.f32 %v171_v41, %v170_v40  ;;  %v177_v63 = vadd.f32 %v176_v45, %v175_v44  ;;  %v324_v0 = vadd.f32 %v323_v60, %v322_v59 }
  0x47   :  { %v167_v2 = vadd.f32 %v166_v35, %v165_v43  ;;  %v180_v3 = vsel %vm153_vm1, %v136_v20, 0.0  ;;  %v325_v5 = vsel %vm153_vm1, %v271_v48, 0.0  ;;  %v331_v6 = vadd.f32 %v330_v62, %v329_v61 }
  0x48   :  { %v174_v7 = vadd.f32 %v173_v42, %v172_v58  ;;  %v179_v8 = vadd.f32 %v178_v46, %v177_v63  ;;  %399 = vlog2.f32 %v160_v47  ;;  %v332_v4 = vsel %vm153_vm1, %v275_v49, 0.0 }
  0x49   :  { %401 = vlog2.f32 %v167_v2  ;;  %v313_v59 = vsel %vm153_vm1, %v279_v50, 0.0  ;;  %v312_v48 = vadd.f32 %v591_v55, %v588_v54  ;;  %v319_v60 = vadd.f32 %v318_v57, %v593_v56 }
  0x4a   :  { %v181_v9 = vadd.f32 %v180_v3, %v179_v8  ;;  %403 = vlog2.f32 %v174_v7  ;;  %v326_v61 = vadd.f32 %v325_v5, %v324_v0  ;;  %v333_v62 = vadd.f32 %v332_v4, %v331_v6 }
  0x4b   :  { %v327_v27 = vsel %vm153_vm1, %v287_v52, 0.0  ;;  %v334_v49 = vsel %vm153_vm1, %v291_v53, 0.0  ;;  %v483_v50 = vmov 1966171168   ;;  %v314_v55 = vadd.f32 %v313_v59, %v312_v48 }
  0x4c   :  { %405 = vlog2.f32 %v181_v9  ;;  %v197_v54 = vunpack.c.l.s4 %v483_v50  ;;  %v321_v56 = vadd.f32 %v320_v32, %v319_v60  ;;  %v328_v57 = vadd.f32 %v327_v27, %v326_v61 }
  0x4d   :  { %v335_v10 = vadd.f32 %v334_v49, %v333_v62 }
  0x4e   :  { %v198_v11 = vunpack.c.0.s8 %v197_v54  ;;  %v341_v14 = vcombine.low %v314_v55, %v321_v56 }
  0x4f   :  { %v342_v16 = vcombine.low %v328_v57, %v335_v10 }
  0x50   :  { %v201_v18 = vsub.s32 %v198_v11, %v538_v15 }
  0x52   :  { %v400_v28 = vpop.eup %399  ;;  %v349_v19 = vrot.slane %v341_v14, %v201_v18  ;;  %v356_v20 = vrot.slane %v342_v16, %v201_v18 }
  0x53   :  { %v402_v12 = vpop.eup %401  ;;  %v183_v51 = vmul.f32 0.6931472, %v400_v28 }
  0x54   :  { %v404_v29 = vpop.eup %403  ;;  %v185_v17 = vmul.f32 0.6931472, %v402_v12  ;;  %v357_v24 = vcombine.low %v349_v19, %v356_v20 }
  0x55   :  { %v187_v52 = vmul.f32 0.6931472, %v404_v29 }
  0x56   :  { %v406_v31 = vpop.eup %405  ;;  %v194_v37 = vcombine.low %v183_v51, %v185_v17  ;;  %v364_v30 = vrot.slane %v357_v24, %v201_v18 }
  0x57   :  { %v189_v53 = vmul.f32 0.6931472, %v406_v31 }
  0x58   :  { %v202_v22 = vrot.slane %v194_v37, %v201_v18 }
  0x59   :  { %v195_v21 = vcombine.low %v187_v52, %v189_v53 }
  0x5b   :  { %v209_v23 = vrot.slane %v195_v21, %v201_v18 }
  0x5d   :  { %v210_v25 = vcombine.low %v202_v22, %v209_v23 }
  0x5f   :  { %v217_v26 = vrot.slane %v210_v25, %v201_v18 }
  0x61   :  { %v219_v33 = vadd.f32 %v217_v26, %v536_v13 }
  0x63   :  { %v366_v35 = vsub.f32 %v219_v33, %v364_v30 }
  0x65   :  { %v367_v36 = vmul.f32 %v366_v35, %v336_v34 }
  0x67   :  { %368 = vst.msk [vmem:[#allocation7] sm:$0xf] %vm524_vm0, %v367_v36 }
  0x68   :  { %462 = shalt.err (!%p459_p6)
}
  0x69   :  { %s463_s10 = scalar_lea.hbm %s674_s2, 64 }
  0x6a   :  { %p464_p7 = scmp.ne.s32.totalorder %s674_s2, %s463_s10  ;;  %p467_p8 = scmp.lt.u32.totalorder %s463_s10, %s674_s2 }
  0x6c   :  { %p469_p9 = pnand %p467_p8, %p464_p7 }
  0x6e   :  { %472 = shalt.err (!%p469_p9)
}
  0x6f   :  { %378 = dma.vmem_to_hbm [thread:$0]  %s376_s6, 64, %s674_s2, [#allocation4]  }
  0x70   :  { %477 = dma.done.wait [#allocation4], 64  }
  0x71   :  { %478 = vsyncadd [#allocation4], 4294967232 }
  0x72   :  { %382 = vsyncpa [#allocation3], 1 }
  0x73   :  { %383 = vsyncpa [#allocation6], 1 }
  0x74   :  { %384 = vsyncpa [#allocation4], 1 }

</bundles_post_ra>
